<compile_context>
chip_gen: v7x
topology: tpu7x:2x2x1
jax: 0.10.0
libtpu: 0.0.40
codegen_flags: <defaults>
</compile_context>

<pallas_src>
import functools

import jax
import jax.numpy as jnp
from jax.experimental import pallas as pl
from jax.experimental.pallas import tpu as pltpu


# ----------------------------- Pallas kernels ------------------------------


def _conv_bn_kernel(p_ref, w_ref, gamma_ref, beta_ref, o_ref):
    """Single-step fused conv + training-mode BatchNorm.

    p_ref:     (Kp, N*P)   bf16 im2col patches, lane axis = N*OH*OW
    w_ref:     (Cout, Kp)  bf16 reshaped conv weight (K zero-padded to Kp)
    gamma_ref: (Cout, 1)   f32 BN weight
    beta_ref:  (Cout, 1)   f32 BN bias
    o_ref:     (Cout, N*P) f32 normalized output
    """
    # Conv as one lane-dense MXU matmul with f32 accumulation.
    # Conv bias omitted: it cancels exactly under training-mode BatchNorm.
    y = jnp.dot(w_ref[...], p_ref[...], preferred_element_type=jnp.float32)

    # BatchNorm statistics over (N, OH, OW) == the full lane axis.
    inv_cnt = 1.0 / y.shape[1]
    mean = jnp.sum(y, axis=1, keepdims=True) * inv_cnt          # (Cout, 1)
    centered = y - mean
    var = jnp.sum(centered * centered, axis=1, keepdims=True) * inv_cnt  # biased
    scale = gamma_ref[...] * jax.lax.rsqrt(var + 1e-5)          # (Cout, 1)

    # Single FMA pass on the VMEM-resident conv output.
    o_ref[...] = centered * scale + beta_ref[...]


def _conv_bias_kernel(p_ref, w_ref, b_ref, o_ref):
    """bn=False path: single-step conv matmul + bias, lane-dense output."""
    o_ref[...] = (
        jnp.dot(w_ref[...], p_ref[...], preferred_element_type=jnp.float32)
        + b_ref[...]                                            # (Cout, 1)
    )


# ------------------------------ host wrappers -------------------------------


def _im2col_lanes(x, ksize, stride, padding):
    """x: (N, Cin, H, W) -> (K, N*OH*OW), K = Cin*KH*KW in OIHW weight order."""
    n, cin, h, w = x.shape
    oh = (h + 2 * padding - ksize) // stride + 1
    ow = (w + 2 * padding - ksize) // stride + 1
    xp = jnp.pad(x, ((0, 0), (0, 0), (padding, padding), (padding, padding)))
    cols = []
    for i in range(ksize):
        for j in range(ksize):
            cols.append(
                xp[:, :, i : i + stride * oh : stride, j : j + stride * ow : stride]
            )
    patches = jnp.stack(cols, axis=2)                    # (N, Cin, KH*KW, OH, OW)
    patches = patches.reshape(n, cin * ksize * ksize, oh * ow)    # (N, K, P)
    # (N, K, P) -> (K, N*P): put the big spatial*batch axis on lanes.
    patches = patches.transpose(1, 0, 2).reshape(cin * ksize * ksize, n * oh * ow)
    return patches, oh, ow


@functools.partial(jax.jit, static_argnames=("kernel_size", "stride", "padding", "bn"))
def conv_forward(x, weight, bias, gamma, beta, *, kernel_size, stride, padding, bn=True):
    """Conv2d(+bias) followed by (optional) training-mode BatchNorm2d. NCHW in/out."""
    n, cin, _, _ = x.shape
    cout = weight.shape[0]

    patches, oh, ow = _im2col_lanes(x, kernel_size, stride, padding)  # (K, N*P)
    k, npix = patches.shape
    w2d = weight.reshape(cout, cin * kernel_size * kernel_size)       # (Cout, K)

    # Zero-pad the contraction dim to a multiple of 8 (sublane alignment).
    kp = pl.cdiv(k, 8) * 8
    if kp != k:
        patches = jnp.pad(patches, ((0, kp - k), (0, 0)))
        w2d = jnp.pad(w2d, ((0, 0), (0, kp - k)))

    # bf16 matmul inputs; accumulation stays f32 inside the kernel.
    patches = patches.astype(jnp.bfloat16)
    w2d = w2d.astype(jnp.bfloat16)

    if bn:
        out2d = pl.pallas_call(
            _conv_bn_kernel,
            out_shape=jax.ShapeDtypeStruct((cout, npix), jnp.float32),
            grid_spec=pltpu.PrefetchScalarGridSpec(
                num_scalar_prefetch=0,
                grid=(1,),
                in_specs=[
                    pl.BlockSpec((kp, npix), lambda i: (0, 0)),
                    pl.BlockSpec((cout, kp), lambda i: (0, 0)),
                    pl.BlockSpec((cout, 1), lambda i: (0, 0)),
                    pl.BlockSpec((cout, 1), lambda i: (0, 0)),
                ],
                out_specs=pl.BlockSpec((cout, npix), lambda i: (0, 0)),
            ),
            compiler_params=pltpu.CompilerParams(
                dimension_semantics=("arbitrary",)),
        )(patches, w2d, gamma.reshape(cout, 1), beta.reshape(cout, 1))
    else:
        out2d = pl.pallas_call(
            _conv_bias_kernel,
            out_shape=jax.ShapeDtypeStruct((cout, npix), jnp.float32),
            grid_spec=pltpu.PrefetchScalarGridSpec(
                num_scalar_prefetch=0,
                grid=(1,),
                in_specs=[
                    pl.BlockSpec((kp, npix), lambda i: (0, 0)),
                    pl.BlockSpec((cout, kp), lambda i: (0, 0)),
                    pl.BlockSpec((cout, 1), lambda i: (0, 0)),
                ],
                out_specs=pl.BlockSpec((cout, npix), lambda i: (0, 0)),
            ),
            compiler_params=pltpu.CompilerParams(
                dimension_semantics=("arbitrary",)),
        )(patches, w2d, bias.reshape(cout, 1))

    # (Cout, N*P) -> NCHW.  Tiny XLA transpose at these shapes; at scale write
    # per-batch lane-dense blocks instead (grid over N on the output only).
    return out2d.reshape(cout, n, oh, ow).transpose(1, 0, 2, 3)


# ----------------------------------- main -----------------------------------

if __name__ == "__main__":
    # Module config: Conv(dim_in=4, dim_out=8, kernel_size=3, stride=1, padding=1)
    dim_in, dim_out, ksize, stride, padding = 4, 8, 3, 1, 1
    N, H, W = 2, 16, 16

    key = jax.random.PRNGKey(0)
    kx, kw, kb = jax.random.split(key, 3)

    x = jax.random.normal(kx, (N, dim_in, H, W), dtype=jnp.float32)

    # Deterministic parameter init (synthetic; shapes from nn.Conv2d/BatchNorm2d).
    fan_in = dim_in * ksize * ksize
    bound = 1.0 / (fan_in ** 0.5)
    weight = jax.random.uniform(
        kw, (dim_out, dim_in, ksize, ksize), jnp.float32, -bound, bound
    )
    bias = jax.random.uniform(kb, (dim_out,), jnp.float32, -bound, bound)
    gamma = jnp.ones((dim_out,), jnp.float32)   # BatchNorm2d default weight
    beta = jnp.zeros((dim_out,), jnp.float32)   # BatchNorm2d default bias

    out_bn = conv_forward(
        x, weight, bias, gamma, beta,
        kernel_size=ksize, stride=stride, padding=padding, bn=True,
    )
    out_conv = conv_forward(
        x, weight, bias, gamma, beta,
        kernel_size=ksize, stride=stride, padding=padding, bn=False,
    )
    jax.block_until_ready((out_bn, out_conv))

    assert out_bn.shape == (N, dim_out, H, W), out_bn.shape
    assert out_conv.shape == (N, dim_out, H, W), out_conv.shape

    # --- matched-precision reference (bf16 matmul inputs, f32 accumulation) ---
    # This is the same arithmetic the kernel performs, so the tolerance can be
    # tight and actually catch logic/layout bugs.
    ref_conv_mm = jax.lax.conv_general_dilated(
        x.astype(jnp.bfloat16), weight.astype(jnp.bfloat16),
        (stride, stride), [(padding, padding)] * 2,
        dimension_numbers=("NCHW", "OIHW", "NCHW"),
        preferred_element_type=jnp.float32,
    )
    ref_conv = ref_conv_mm + bias[None, :, None, None]
    mu = ref_conv.mean(axis=(0, 2, 3), keepdims=True)
    var = ref_conv.var(axis=(0, 2, 3), keepdims=True)        # biased variance
    ref_bn = (ref_conv - mu) * jax.lax.rsqrt(var + 1e-5) \
        * gamma[None, :, None, None] + beta[None, :, None, None]

    assert jnp.allclose(out_conv, ref_conv, atol=2e-3, rtol=2e-3), \
        float(jnp.max(jnp.abs(out_conv - ref_conv)))
    assert jnp.allclose(out_bn, ref_bn, atol=2e-3, rtol=2e-3), \
        float(jnp.max(jnp.abs(out_bn - ref_bn)))

    # --- loose sanity check vs. the full-f32 module semantics ---
    ref_conv_f32 = jax.lax.conv_general_dilated(
        x, weight, (stride, stride), [(padding, padding)] * 2,
        dimension_numbers=("NCHW", "OIHW", "NCHW"),
    ) + bias[None, :, None, None]
    mu32 = ref_conv_f32.mean(axis=(0, 2, 3), keepdims=True)
    var32 = ref_conv_f32.var(axis=(0, 2, 3), keepdims=True)
    ref_bn_f32 = (ref_conv_f32 - mu32) * jax.lax.rsqrt(var32 + 1e-5) \
        * gamma[None, :, None, None] + beta[None, :, None, None]
    assert jnp.allclose(out_conv, ref_conv_f32, atol=5e-2, rtol=5e-2)
    assert jnp.allclose(out_bn, ref_bn_f32, atol=5e-2, rtol=5e-2)

    print("KERNEL_OK")
</pallas_src>

<mosaic_0001>
module attributes {stable_mosaic.version = 11 : i64} {
  func.func @_conv_bn_kernel(%arg0: i32, %arg1: memref<40x512xbf16, #tpu.memory_space<vmem>>, %arg2: memref<8x40xbf16, #tpu.memory_space<vmem>>, %arg3: memref<8x1xf32, #tpu.memory_space<vmem>>, %arg4: memref<8x1xf32, #tpu.memory_space<vmem>>, %arg5: memref<8x512xf32, #tpu.memory_space<vmem>>) attributes {dimension_semantics = [#tpu.dimension_semantics<arbitrary>], iteration_bounds = array<i64: 1>, scalar_prefetch = 0 : i64, scratch_operands = 0 : i64, tpu.core_type = #tpu.core_type<tc>, window_params = [{pipeline_mode = #tpu.pipeline_mode<synchronous>, transform_indices = @transform_0, window_bounds = array<i64: 40, 512>}, {pipeline_mode = #tpu.pipeline_mode<synchronous>, transform_indices = @transform_1, window_bounds = array<i64: 8, 40>}, {pipeline_mode = #tpu.pipeline_mode<synchronous>, transform_indices = @transform_2, window_bounds = array<i64: 8, 1>}, {pipeline_mode = #tpu.pipeline_mode<synchronous>, transform_indices = @transform_3, window_bounds = array<i64: 8, 1>}, {pipeline_mode = #tpu.pipeline_mode<synchronous>, transform_indices = @transform_4, window_bounds = array<i64: 8, 512>}]} {
    %c0 = arith.constant 0 : index
    %c0_0 = arith.constant 0 : index
    %0 = vector.load %arg2[%c0, %c0_0] : memref<8x40xbf16, #tpu.memory_space<vmem>>, vector<8x40xbf16>
    %c0_1 = arith.constant 0 : index
    %c0_2 = arith.constant 0 : index
    %1 = vector.load %arg1[%c0_1, %c0_2] : memref<40x512xbf16, #tpu.memory_space<vmem>>, vector<40x512xbf16>
    %cst = arith.constant dense<0.000000e+00> : vector<8x512xf32>
    %2 = tpu.matmul %0, %1, %cst {dimension_numbers = #tpu.dot_dimension_numbers<[1], [0], [0], [1], [0, 0, 1, 1], [], []>} : vector<8x40xbf16>, vector<40x512xbf16>, vector<8x512xf32> -> vector<8x512xf32>
    %cst_3 = arith.constant dense<0.000000e+00> : vector<8xf32>
    %3 = vector.multi_reduction <add>, %2, %cst_3 [1] : vector<8x512xf32> to vector<8xf32>
    %4 = vector.shape_cast %3 : vector<8xf32> to vector<8x1xf32>
    %cst_4 = arith.constant 0.001953125 : f32
    %5 = vector.broadcast %cst_4 : f32 to vector<8x1xf32>
    %6 = arith.mulf %4, %5 : vector<8x1xf32>
    %7 = vector.broadcast %6 : vector<8x1xf32> to vector<8x512xf32>
    %8 = arith.subf %2, %7 : vector<8x512xf32>
    %9 = arith.mulf %8, %8 : vector<8x512xf32>
    %cst_5 = arith.constant dense<0.000000e+00> : vector<8xf32>
    %10 = vector.multi_reduction <add>, %9, %cst_5 [1] : vector<8x512xf32> to vector<8xf32>
    %11 = vector.shape_cast %10 : vector<8xf32> to vector<8x1xf32>
    %cst_6 = arith.constant 0.001953125 : f32
    %12 = vector.broadcast %cst_6 : f32 to vector<8x1xf32>
    %13 = arith.mulf %11, %12 : vector<8x1xf32>
    %c0_7 = arith.constant 0 : index
    %c0_8 = arith.constant 0 : index
    %14 = vector.load %arg3[%c0_7, %c0_8] : memref<8x1xf32, #tpu.memory_space<vmem>>, vector<8x1xf32>
    %cst_9 = arith.constant 9.99999974E-6 : f32
    %15 = vector.broadcast %cst_9 : f32 to vector<8x1xf32>
    %16 = arith.addf %13, %15 : vector<8x1xf32>
    %17 = math.rsqrt %16 : vector<8x1xf32>
    %18 = arith.mulf %14, %17 : vector<8x1xf32>
    %19 = vector.broadcast %18 : vector<8x1xf32> to vector<8x512xf32>
    %20 = arith.mulf %8, %19 : vector<8x512xf32>
    %c0_10 = arith.constant 0 : index
    %c0_11 = arith.constant 0 : index
    %21 = vector.load %arg4[%c0_10, %c0_11] : memref<8x1xf32, #tpu.memory_space<vmem>>, vector<8x1xf32>
    %22 = vector.broadcast %21 : vector<8x1xf32> to vector<8x512xf32>
    %23 = arith.addf %20, %22 : vector<8x512xf32>
    %c0_12 = arith.constant 0 : index
    %c0_13 = arith.constant 0 : index
    %24 = vector.load %arg5[%c0_12, %c0_13] : memref<8x512xf32, #tpu.memory_space<vmem>>, vector<8x512xf32>
    tpu.vector_store %arg5[%c0_12, %c0_13], %23 {strides = array<i32>} : memref<8x512xf32, #tpu.memory_space<vmem>>, vector<8x512xf32>,
    return
  }
  func.func @transform_0(%arg0: i32) -> (i32, i32) {
    %c0_i32 = arith.constant 0 : i32
    %c0_i32_0 = arith.constant 0 : i32
    %c0_i32_1 = arith.constant 0 : i32
    return %c0_i32, %c0_i32_0 : i32, i32
  }
  func.func @transform_1(%arg0: i32) -> (i32, i32) {
    %c0_i32 = arith.constant 0 : i32
    %c0_i32_0 = arith.constant 0 : i32
    %c0_i32_1 = arith.constant 0 : i32
    return %c0_i32, %c0_i32_0 : i32, i32
  }
  func.func @transform_2(%arg0: i32) -> (i32, i32) {
    %c0_i32 = arith.constant 0 : i32
    %c0_i32_0 = arith.constant 0 : i32
    %c0_i32_1 = arith.constant 0 : i32
    return %c0_i32, %c0_i32_0 : i32, i32
  }
  func.func @transform_3(%arg0: i32) -> (i32, i32) {
    %c0_i32 = arith.constant 0 : i32
    %c0_i32_0 = arith.constant 0 : i32
    %c0_i32_1 = arith.constant 0 : i32
    return %c0_i32, %c0_i32_0 : i32, i32
  }
  func.func @transform_4(%arg0: i32) -> (i32, i32) {
    %c0_i32 = arith.constant 0 : i32
    %c0_i32_0 = arith.constant 0 : i32
    %c0_i32_1 = arith.constant 0 : i32
    return %c0_i32, %c0_i32_0 : i32, i32
  }
}

</mosaic_0001>

<bundles_post_ra>
// kernel: conv_forward.1
= control target key start
LH: loop header
LB: loop body
LE: loop exit
PB: predicated region body
PF: predicated region fallthrough
CT: control target
= control target key end

     0   :  { %v266_v1 = vmov 0   ;;  %vm83_vm0 = vcmask 1043456   ;;  %vm79_vm1 = vcmask 326656   ;;  %s343_s0 = inlined_call_operand.vmem [shape: bf16[40,512], index: 0, kind: input, shape index: {}]   ;;  %s344_s1 = inlined_call_operand.vmem [shape: bf16[8,40], index: 1, kind: input, shape index: {}]   ;;  %s345_s2 = inlined_call_operand.vmem [shape: f32[8,1], index: 2, kind: input, shape index: {}]   ;;  %s346_s3 = inlined_call_operand.vmem [shape: f32[8,1], index: 3, kind: input, shape index: {}]   ;;  %s347_s4 = inlined_call_operand.vmem [shape: f32[8,512], index: 4, kind: output, shape index: {}]  }
   0x1   :  { %v248_v0 = vld [vmem:[%s343_s0 + $0x4] ss:$16 sps:$4 sm:$0xff]   ;;  %128 = vmatprep.mubr.bf16.mxu0 %v266_v1  ;;  %169 = vmatprep.mubr.bf16.mxu1 %v266_v1  ;;  %v250_v2 = vld [vmem:[%s343_s0 + $0xc] ss:$16 sps:$4 sm:$0xff]   ;;  %v252_v3 = vld [vmem:[%s343_s0] ss:$16 sps:$4 sm:$0xff]  }
   0x2   :  { %246 = vset.pattern.permute.xlu1 %v266_v1  ;;  %247 = vset.pattern.permute.xlu0 %v266_v1  ;;  %v253_v4 = vld [vmem:[%s343_s0 + $0x8] ss:$16 sps:$4 sm:$0xff]   ;;  %v254_v5 = vld [vmem:[%s343_s0 + $0x24] ss:$16 sps:$4 sm:$0xff]   ;;  %v256_v6 = vld [vmem:[%s343_s0 + $0x2c] ss:$16 sps:$4 sm:$0xff]  }
   0x3   :  { %96 = vmatprep.subr.bf16.mxu0 %v248_v0  ;;  %137 = vmatprep.subr.bf16.mxu1 %v250_v2  ;;  %v258_v7 = vld [vmem:[%s343_s0 + $0x20] ss:$16 sps:$4 sm:$0xff]   ;;  %v259_v8 = vld [vmem:[%s343_s0 + $0x28] ss:$16 sps:$4 sm:$0xff]  }
   0x4   :  { %97 = vmatpush1.bf16.msra.mxu0 %v252_v3  ;;  %138 = vmatpush1.bf16.msra.mxu1 %v253_v4  ;;  %v27_v9 = vld [vmem:[%s343_s0 + $0x40] sm:$0xff]  ;;  %v28_v10 = vld [vmem:[%s343_s0 + $0x48] sm:$0xff] }
   0x5   :  { %98 = vmatprep.subr.bf16.mxu0 %v254_v5  ;;  %139 = vmatprep.subr.bf16.mxu1 %v256_v6  ;;  %v238_v11 = vcombine.high %v27_v9, %v27_v9  ;;  %v240_v12 = vcombine.high %v28_v10, %v28_v10  ;;  %v237_v13 = vcombine.low %v27_v9, %v27_v9  ;;  %v18_v17 = vld [vmem:[%s344_s1] sm:$0xf] }
   0x6   :  { %v239_v14 = vcombine.low %v28_v10, %v28_v10  ;;  %v198_v45 = vld [vmem:[%s345_s2] sm:$0xff] }
   0x7   :  { %v85_v15 = vsel %vm83_vm0, %v237_v13, 0  ;;  %v211_v48 = vld [vmem:[%s346_s3] sm:$0xff] }
   0x8   :  { %99 = vmatpush1.bf16.msra.mxu0 %v258_v7  ;;  %140 = vmatpush1.bf16.msra.mxu1 %v259_v8  ;;  %v91_v16 = vsel %vm83_vm0, %v239_v14, 0 }
   0x9   :  { %241 = vmatprep.subr.msk.bf16.mxu0 %vm83_vm0, %v238_v11  ;;  %243 = vmatprep.subr.msk.bf16.mxu1 %vm83_vm0, %v240_v12 }
   0xc   :  { %101 = vmatpush1.bf16.msra.mxu0 %v85_v15  ;;  %142 = vmatpush1.bf16.msra.mxu1 %v91_v16 }
   0xf   :  { %242 = vmatmul.mubr.msk.bf16.vlgmr.msra.gmra.mrb[0].mxu0 %vm79_vm1, %v18_v17  ;;  %244 = vmatmul.mubr.msk.bf16.vlgmr.msra.gmra.mrb[0].mxu1 %vm79_vm1, %v18_v17 }
  0xe2   :  { %v130_v18 = vpop.f32.mrb[0].mxu0  ;;  %v171_v19 = vpop.f32.mrb[0].mxu1 }
  0xe3   :  { %v132_v20 = vpop.f32.mrb[1].mxu0  ;;  %v173_v21 = vpop.f32.mrb[1].mxu1 }
  0xe4   :  { %v178_v22 = vadd.f32 %v132_v20, %v130_v18  ;;  %v134_v23 = vpop.f32.mrb[2].mxu0  ;;  %v175_v24 = vpop.f32.mrb[2].mxu1 }
  0xe5   :  { %v135_v25 = vpop.f32.mrb[3].mxu0  ;;  %v176_v26 = vpop.f32.mrb[3].mxu1 }
  0xe6   :  { %v179_v27 = vadd.f32 %v178_v22, %v171_v19 }
  0xe8   :  { %v180_v28 = vadd.f32 %v179_v27, %v173_v21 }
  0xea   :  { %181 = vadd.xlane.f32.xlu0 %v180_v28 }
 0x177   :  { %v182_v29 = vpop.xlane.xlu0 %181 }
 0x178   :  { %v183_v30 = vmul.f32 0.001953125, %v182_v29 }
 0x17a   :  { %v184_v31 = vsub.f32 %v130_v18, %v183_v30  ;;  %v185_v32 = vsub.f32 %v132_v20, %v183_v30  ;;  %v186_v33 = vsub.f32 %v171_v19, %v183_v30  ;;  %v187_v34 = vsub.f32 %v173_v21, %v183_v30 }
 0x17c   :  { %v188_v35 = vmul.f32 %v184_v31, %v184_v31  ;;  %v189_v36 = vmul.f32 %v185_v32, %v185_v32  ;;  %v190_v37 = vmul.f32 %v186_v33, %v186_v33  ;;  %v191_v39 = vmul.f32 %v187_v34, %v187_v34 }
 0x17e   :  { %v192_v38 = vadd.f32 %v189_v36, %v188_v35 }
 0x180   :  { %v193_v40 = vadd.f32 %v192_v38, %v190_v37 }
 0x182   :  { %v194_v41 = vadd.f32 %v193_v40, %v191_v39 }
 0x184   :  { %195 = vadd.xlane.f32.xlu0 %v194_v41 }
 0x211   :  { %v196_v42 = vpop.xlane.xlu0 %195 }
 0x212   :  { %v197_v43 = vmul.f32 0.001953125, %v196_v42 }
 0x214   :  { %v199_v44 = vadd.f32 1e-05, %v197_v43 }
 0x216   :  { %264 = vrsqrt.f32 %v199_v44 }
 0x220   :  { %v265_v46 = vpop.eup %264 }
 0x221   :  { %v201_v47 = vmul.f32 %v265_v46, %v198_v45 }
 0x223   :  { %204 = vperm.xlu1 %246, %v201_v47  }
 0x227   :  { %214 = vperm.xlu1 %246, %v211_v48  }
 0x2a2   :  { %v205_v49 = vpop.permute.xlu1 %204 }
 0x2a3   :  { %v207_v50 = vmul.f32 %v205_v49, %v184_v31  ;;  %v208_v51 = vmul.f32 %v205_v49, %v185_v32  ;;  %v209_v52 = vmul.f32 %v205_v49, %v186_v33  ;;  %v210_v53 = vmul.f32 %v205_v49, %v187_v34 }
 0x2a6   :  { %v215_v54 = vpop.permute.xlu1 %214 }
 0x2a7   :  { %v217_v55 = vadd.f32 %v215_v54, %v207_v50  ;;  %v218_v56 = vadd.f32 %v215_v54, %v208_v51  ;;  %v219_v57 = vadd.f32 %v215_v54, %v209_v52  ;;  %v220_v58 = vadd.f32 %v215_v54, %v210_v53 }
 0x2a9   :  { %221 = vst [vmem:[%s347_s4] sm:$0xff] %v217_v55  ;;  %222 = vst [vmem:[%s347_s4 + $0x8] sm:$0xff] %v218_v56 }
 0x2aa   :  { %223 = vst [vmem:[%s347_s4 + $0x10] sm:$0xff] %v219_v57  ;;  %224 = vst [vmem:[%s347_s4 + $0x18] sm:$0xff] %v220_v58 }

</bundles_post_ra>
